<compile_context>
chip_gen: v7x
topology: tpu7x:2x2x1
jax: 0.10.0
libtpu: 0.0.40
codegen_flags: <defaults>
</compile_context>

<pallas_src>
import functools

import jax
import jax.numpy as jnp
from jax.experimental import pallas as pl
from jax.experimental.pallas import tpu as pltpu

_HAS_BUFFERED = hasattr(pl, "Buffered")


def _round_up(x, m):
    return (x + m - 1) // m * m


@functools.lru_cache(maxsize=1)
def _device_vmem_bytes():
    """Physical VMEM per TensorCore; conservative 64 MiB (v7x) fallback."""
    try:
        cap = int(getattr(pltpu.get_tpu_info(), "vmem_capacity_bytes", 0))
        if cap > 0:
            return cap
    except Exception:
        pass
    return 64 << 20


def _vmem_estimate(tm, H, Dp, act_bytes, weight_buf):
    """Rough VMEM footprint for one pipelined grid step (bytes)."""
    # double-buffered row tiles: x, residual in; out, down out
    io = 2 * tm * (2 * H + H + Dp) * act_bytes
    # weights (bf16) + LN/bias params (f32); weight_buf = 1 if single-buffered
    weights = weight_buf * ((H * Dp + Dp * H) * 2 + (2 * H + Dp + H) * 4)
    # f32 intermediates materialized in the kernel body (x, h, up/out, down)
    body = tm * (4 * H + 2 * Dp) * 4
    return io + weights + body + (2 << 20)


def _choose_tm(N, H, Dp, act_bytes, weight_buf, vmem_cap, tm_req=None):
    """Largest row tile (multiple of 8) that fits the VMEM budget."""
    budget = max(int(vmem_cap * 0.9), 8 << 20)
    n8 = _round_up(max(N, 1), 8)

    base = [1024, 512, 256, 128, 64, 32, 16, 8]
    if tm_req is not None:
        req = max(8, _round_up(int(tm_req), 8))
        base = [req] + [c for c in base if c < req]

    cands = []
    for c in base:
        c = min(c, n8)
        if c not in cands:
            cands.append(c)

    tm = 8
    for c in cands:
        if _vmem_estimate(c, H, Dp, act_bytes, weight_buf) <= budget:
            tm = c
            break

    # Guarantee >= 2 grid steps when the row count allows it, so the
    # "parallel" grid axis can be sharded across both v7x TensorCores.
    if N >= 16:
        tm = min(tm, _round_up(-(-N // 2), 8))
    return max(8, tm)


def _const_spec(shape, single_buffer):
    """Grid-invariant block; single-buffered when supported."""
    if single_buffer and _HAS_BUFFERED:
        return pl.BlockSpec(shape, lambda i: (0, 0),
                            pipeline_mode=pl.Buffered(1))
    return pl.BlockSpec(shape, lambda i: (0, 0))


def adapter_kernel(x_ref, res_ref, g_ref, beta_ref, wd_ref, bd_ref,
                   wu_ref, bu_ref, out_ref, down_ref):
    """One row-tile of the adapter forward pass."""
    x = x_ref[...].astype(jnp.float32)                         # (tm, H)

    # --- LayerNorm before (eps = PyTorch default 1e-5), fused one-pass stats
    mean = jnp.mean(x, axis=-1, keepdims=True)
    mean_sq = jnp.mean(x * x, axis=-1, keepdims=True)
    var = jnp.maximum(mean_sq - mean * mean, 0.0)
    xn = (x - mean) * jax.lax.rsqrt(var + 1e-5)
    h = xn * g_ref[...] + beta_ref[...]                        # (tm, H) f32

    # --- down projection (bf16 MXU, f32 accumulate) + bias + ReLU ---
    down = jnp.dot(h.astype(jnp.bfloat16), wd_ref[...],
                   preferred_element_type=jnp.float32)
    down = jnp.maximum(down + bd_ref[...], 0.0)                # (tm, Dp) f32

    # --- up projection (bf16 MXU, f32 accumulate) + bias + residual ---
    up = jnp.dot(down.astype(jnp.bfloat16), wu_ref[...],
                 preferred_element_type=jnp.float32)
    out = up + bu_ref[...] + res_ref[...].astype(jnp.float32)  # (tm, H) f32

    out_ref[...] = out.astype(out_ref.dtype)
    down_ref[...] = down.astype(down_ref.dtype)


@functools.partial(jax.jit,
                   static_argnames=("tm_eff", "vmem_limit", "single_buffer"))
def _adapter_core(x2, r2, gamma, beta, w_down, b_down, w_up, b_up,
                  tm_eff, vmem_limit, single_buffer):
    n_pad, H = x2.shape
    Dp = w_down.shape[1]

    row_h = pl.BlockSpec((tm_eff, H), lambda i: (i, 0))
    row_d = pl.BlockSpec((tm_eff, Dp), lambda i: (i, 0))
    const = lambda s: _const_spec(s, single_buffer)

    out, down = pl.pallas_call(
        adapter_kernel,
        out_shape=(
            jax.ShapeDtypeStruct((n_pad, H), x2.dtype),   # output
            jax.ShapeDtypeStruct((n_pad, Dp), x2.dtype),  # down (lane-padded)
        ),
        grid_spec=pltpu.PrefetchScalarGridSpec(
            num_scalar_prefetch=0,
            grid=(n_pad // tm_eff,),
            in_specs=[
                row_h,                 # x
                row_h,                 # residual
                const((1, H)),         # ln gamma
                const((1, H)),         # ln beta
                const((H, Dp)),        # w_down (bf16)
                const((1, Dp)),        # b_down
                const((Dp, H)),        # w_up (bf16)
                const((1, H)),         # b_up
            ],
            out_specs=[row_h, row_d],
        ),
        compiler_params=pltpu.CompilerParams(
            dimension_semantics=("parallel",),
            vmem_limit_bytes=vmem_limit),
    )(x2, r2, gamma, beta, w_down, b_down, w_up, b_up)
    return out, down


def adapter_forward(x, residual_input, params, tm=None):
    """x, residual_input: [B, S, H]. Returns (output, down, up).

    Activation I/O dtype follows x.dtype (pass bf16 for the bandwidth win).
    """
    B, S, H = x.shape
    D = params["w_down"].shape[1]
    N = B * S
    act_bytes = jnp.dtype(x.dtype).itemsize
    vmem_cap = _device_vmem_bytes()

    # Pad the bottleneck dim to a lane-dense multiple of 128 (zero columns of
    # w_down / b_down and zero rows of w_up contribute exactly 0).
    Dp = _round_up(D, 128)
    w_down = params["w_down"].astype(jnp.bfloat16)
    w_up = params["w_up"].astype(jnp.bfloat16)
    b_down = params["b_down"].astype(jnp.float32)
    if Dp != D:
        w_down = jnp.pad(w_down, ((0, 0), (0, Dp - D)))
        b_down = jnp.pad(b_down, ((0, Dp - D),))
        w_up = jnp.pad(w_up, ((0, Dp - D), (0, 0)))

    gamma = params["ln_gamma"].astype(jnp.float32).reshape(1, H)
    beta = params["ln_beta"].astype(jnp.float32).reshape(1, H)
    b_down = b_down.reshape(1, Dp)
    b_up = params["b_up"].astype(jnp.float32).reshape(1, H)

    x2_full = x.reshape(N, H)
    r2_full = residual_input.reshape(N, H)

    def _run(single_buffer):
        weight_buf = 1 if single_buffer else 2
        tm_eff = _choose_tm(N, H, Dp, act_bytes, weight_buf, vmem_cap, tm)
        n_pad = _round_up(N, tm_eff)
        x2, r2 = x2_full, r2_full
        if n_pad != N:
            pad = ((0, n_pad - N), (0, 0))
            x2 = jnp.pad(x2, pad)
            r2 = jnp.pad(r2, pad)
        vmem_limit = int(min(
            vmem_cap,
            max(_vmem_estimate(tm_eff, H, Dp, act_bytes, weight_buf),
                32 << 20)))
        return _adapter_core(x2, r2, gamma, beta, w_down, b_down, w_up, b_up,
                             tm_eff=tm_eff, vmem_limit=vmem_limit,
                             single_buffer=single_buffer)

    if _HAS_BUFFERED:
        try:
            out, down = _run(True)
        except Exception:
            # pipeline_mode unsupported on this jax version -> default path
            out, down = _run(False)
    else:
        out, down = _run(False)

    out = out[:N]
    down = down[:N, :D]
    # residual_before_ln=True, no post-LN  =>  up == output - residual_input
    up = (out.astype(jnp.float32)
          - r2_full.astype(jnp.float32)).astype(out.dtype)

    return (out.reshape(B, S, H),
            down.reshape(B, S, D),
            up.reshape(B, S, H))


def init_params(key, input_size, down_sample):
    """Deterministic synthetic parameter init (shapes match the nn.Module)."""
    k1, k2, k3, k4 = jax.random.split(key, 4)
    return {
        "ln_gamma": jnp.ones((input_size,), jnp.float32),
        "ln_beta": jnp.zeros((input_size,), jnp.float32),
        # stored [in, out] (transpose of PyTorch's [out, in]) for x @ W
        "w_down": (jax.random.normal(k1, (input_size, down_sample),
                                     jnp.float32) * 0.02),
        "b_down": jax.random.normal(k2, (down_sample,), jnp.float32) * 0.02,
        "w_up": (jax.random.normal(k3, (down_sample, input_size),
                                   jnp.float32) * 0.02),
        "b_up": jax.random.normal(k4, (input_size,), jnp.float32) * 0.02,
    }


def adapter_reference(x, residual_input, params):
    """Pure-JAX reference emulating the kernel's precision contract
    (one-pass LN stats, bf16 matmul inputs, f32 accumulation)."""
    xf = x.astype(jnp.float32)
    mean = jnp.mean(xf, axis=-1, keepdims=True)
    var = jnp.maximum(jnp.mean(xf * xf, axis=-1, keepdims=True) - mean * mean,
                      0.0)
    h = (xf - mean) * jax.lax.rsqrt(var + 1e-5)
    h = h * params["ln_gamma"] + params["ln_beta"]

    h_b = h.astype(jnp.bfloat16).astype(jnp.float32)
    wd = params["w_down"].astype(jnp.bfloat16).astype(jnp.float32)
    down = jnp.maximum(h_b @ wd + params["b_down"], 0.0)

    down_b = down.astype(jnp.bfloat16).astype(jnp.float32)
    wu = params["w_up"].astype(jnp.bfloat16).astype(jnp.float32)
    up = down_b @ wu + params["b_up"]

    out = up + residual_input.astype(jnp.float32)
    return out, down, up


if __name__ == "__main__":
    # Small shapes implied by the forward: sequence of hidden vectors.
    batch, seq, hidden = 2, 8, 32
    down_sample = hidden // 2   # default down_sample=None -> input_size // 2

    key = jax.random.PRNGKey(0)
    kx, kr, kp = jax.random.split(key, 3)
    x = jax.random.normal(kx, (batch, seq, hidden), jnp.float32)
    residual = jax.random.normal(kr, (batch, seq, hidden), jnp.float32)
    params = init_params(kp, hidden, down_sample)

    out, down, up = adapter_forward(x, residual, params)
    jax.block_until_ready((out, down, up))

    ref_out, ref_down, ref_up = adapter_reference(x, residual, params)
    assert jnp.allclose(out, ref_out, atol=2e-3, rtol=2e-3)
    assert jnp.allclose(down, ref_down, atol=2e-3, rtol=2e-3)
    assert jnp.allclose(up, ref_up, atol=2e-3, rtol=2e-3)

    print("KERNEL_OK")
</pallas_src>

<mosaic_0001>
module attributes {stable_mosaic.version = 11 : i64} {
  func.func @adapter_kernel(%arg0: i32, %arg1: memref<8x32xf32, #tpu.memory_space<vmem>>, %arg2: memref<8x32xf32, #tpu.memory_space<vmem>>, %arg3: memref<1x32xf32, #tpu.memory_space<vmem>>, %arg4: memref<1x32xf32, #tpu.memory_space<vmem>>, %arg5: memref<32x128xbf16, #tpu.memory_space<vmem>>, %arg6: memref<1x128xf32, #tpu.memory_space<vmem>>, %arg7: memref<128x32xbf16, #tpu.memory_space<vmem>>, %arg8: memref<1x32xf32, #tpu.memory_space<vmem>>, %arg9: memref<8x32xf32, #tpu.memory_space<vmem>>, %arg10: memref<8x128xf32, #tpu.memory_space<vmem>>) attributes {dimension_semantics = [#tpu.dimension_semantics<parallel>], iteration_bounds = array<i64: 2>, scalar_prefetch = 0 : i64, scratch_operands = 0 : i64, tpu.core_type = #tpu.core_type<tc>, window_params = [{transform_indices = @transform_0, window_bounds = array<i64: 8, 32>}, {transform_indices = @transform_1, window_bounds = array<i64: 8, 32>}, {pipeline_mode = #tpu.pipeline_mode<synchronous>, transform_indices = @transform_2, window_bounds = array<i64: 1, 32>}, {pipeline_mode = #tpu.pipeline_mode<synchronous>, transform_indices = @transform_3, window_bounds = array<i64: 1, 32>}, {pipeline_mode = #tpu.pipeline_mode<synchronous>, transform_indices = @transform_4, window_bounds = array<i64: 32, 128>}, {pipeline_mode = #tpu.pipeline_mode<synchronous>, transform_indices = @transform_5, window_bounds = array<i64: 1, 128>}, {pipeline_mode = #tpu.pipeline_mode<synchronous>, transform_indices = @transform_6, window_bounds = array<i64: 128, 32>}, {pipeline_mode = #tpu.pipeline_mode<synchronous>, transform_indices = @transform_7, window_bounds = array<i64: 1, 32>}, {transform_indices = @transform_8, window_bounds = array<i64: 8, 32>}, {transform_indices = @transform_9, window_bounds = array<i64: 8, 128>}]} {
    %c0 = arith.constant 0 : index
    %c0_0 = arith.constant 0 : index
    %0 = vector.load %arg1[%c0, %c0_0] : memref<8x32xf32, #tpu.memory_space<vmem>>, vector<8x32xf32>
    %cst = arith.constant dense<0.000000e+00> : vector<8xf32>
    %1 = vector.multi_reduction <add>, %0, %cst [1] : vector<8x32xf32> to vector<8xf32>
    %2 = vector.shape_cast %1 : vector<8xf32> to vector<8x1xf32>
    %cst_1 = arith.constant 3.200000e+01 : f32
    %3 = vector.broadcast %cst_1 : f32 to vector<8x1xf32>
    %4 = arith.divf %2, %3 : vector<8x1xf32>
    %5 = arith.mulf %0, %0 : vector<8x32xf32>
    %cst_2 = arith.constant dense<0.000000e+00> : vector<8xf32>
    %6 = vector.multi_reduction <add>, %5, %cst_2 [1] : vector<8x32xf32> to vector<8xf32>
    %7 = vector.shape_cast %6 : vector<8xf32> to vector<8x1xf32>
    %cst_3 = arith.constant 3.200000e+01 : f32
    %8 = vector.broadcast %cst_3 : f32 to vector<8x1xf32>
    %9 = arith.divf %7, %8 : vector<8x1xf32>
    %10 = arith.mulf %4, %4 : vector<8x1xf32>
    %11 = arith.subf %9, %10 : vector<8x1xf32>
    %cst_4 = arith.constant 0.000000e+00 : f32
    %12 = vector.broadcast %cst_4 : f32 to vector<8x1xf32>
    %13 = arith.maximumf %11, %12 : vector<8x1xf32>
    %14 = vector.broadcast %4 : vector<8x1xf32> to vector<8x32xf32>
    %15 = arith.subf %0, %14 : vector<8x32xf32>
    %cst_5 = arith.constant 9.99999974E-6 : f32
    %16 = vector.broadcast %cst_5 : f32 to vector<8x1xf32>
    %17 = arith.addf %13, %16 : vector<8x1xf32>
    %18 = math.rsqrt %17 : vector<8x1xf32>
    %19 = vector.broadcast %18 : vector<8x1xf32> to vector<8x32xf32>
    %20 = arith.mulf %15, %19 : vector<8x32xf32>
    %c0_6 = arith.constant 0 : index
    %c0_7 = arith.constant 0 : index
    %21 = vector.load %arg3[%c0_6, %c0_7] : memref<1x32xf32, #tpu.memory_space<vmem>>, vector<1x32xf32>
    %22 = vector.broadcast %21 : vector<1x32xf32> to vector<8x32xf32>
    %23 = arith.mulf %20, %22 : vector<8x32xf32>
    %c0_8 = arith.constant 0 : index
    %c0_9 = arith.constant 0 : index
    %24 = vector.load %arg4[%c0_8, %c0_9] : memref<1x32xf32, #tpu.memory_space<vmem>>, vector<1x32xf32>
    %25 = vector.broadcast %24 : vector<1x32xf32> to vector<8x32xf32>
    %26 = arith.addf %23, %25 : vector<8x32xf32>
    %27 = arith.truncf %26 : vector<8x32xf32> to vector<8x32xbf16>
    %c0_10 = arith.constant 0 : index
    %c0_11 = arith.constant 0 : index
    %28 = vector.load %arg5[%c0_10, %c0_11] : memref<32x128xbf16, #tpu.memory_space<vmem>>, vector<32x128xbf16>
    %cst_12 = arith.constant dense<0.000000e+00> : vector<8x128xf32>
    %29 = tpu.matmul %27, %28, %cst_12 {dimension_numbers = #tpu.dot_dimension_numbers<[1], [0], [0], [1], [0, 0, 1, 1], [], []>} : vector<8x32xbf16>, vector<32x128xbf16>, vector<8x128xf32> -> vector<8x128xf32>
    %c0_13 = arith.constant 0 : index
    %c0_14 = arith.constant 0 : index
    %30 = vector.load %arg6[%c0_13, %c0_14] : memref<1x128xf32, #tpu.memory_space<vmem>>, vector<1x128xf32>
    %31 = vector.broadcast %30 : vector<1x128xf32> to vector<8x128xf32>
    %32 = arith.addf %29, %31 : vector<8x128xf32>
    %cst_15 = arith.constant 0.000000e+00 : f32
    %33 = vector.broadcast %cst_15 : f32 to vector<8x128xf32>
    %34 = arith.maximumf %32, %33 : vector<8x128xf32>
    %35 = arith.truncf %34 : vector<8x128xf32> to vector<8x128xbf16>
    %c0_16 = arith.constant 0 : index
    %c0_17 = arith.constant 0 : index
    %36 = vector.load %arg7[%c0_16, %c0_17] : memref<128x32xbf16, #tpu.memory_space<vmem>>, vector<128x32xbf16>
    %cst_18 = arith.constant dense<0.000000e+00> : vector<8x32xf32>
    %37 = tpu.matmul %35, %36, %cst_18 {dimension_numbers = #tpu.dot_dimension_numbers<[1], [0], [0], [1], [0, 0, 1, 1], [], []>} : vector<8x128xbf16>, vector<128x32xbf16>, vector<8x32xf32> -> vector<8x32xf32>
    %c0_19 = arith.constant 0 : index
    %c0_20 = arith.constant 0 : index
    %38 = vector.load %arg8[%c0_19, %c0_20] : memref<1x32xf32, #tpu.memory_space<vmem>>, vector<1x32xf32>
    %39 = vector.broadcast %38 : vector<1x32xf32> to vector<8x32xf32>
    %40 = arith.addf %37, %39 : vector<8x32xf32>
    %c0_21 = arith.constant 0 : index
    %c0_22 = arith.constant 0 : index
    %41 = vector.load %arg2[%c0_21, %c0_22] : memref<8x32xf32, #tpu.memory_space<vmem>>, vector<8x32xf32>
    %42 = arith.addf %40, %41 : vector<8x32xf32>
    %c0_23 = arith.constant 0 : index
    %c0_24 = arith.constant 0 : index
    %43 = vector.load %arg9[%c0_23, %c0_24] : memref<8x32xf32, #tpu.memory_space<vmem>>, vector<8x32xf32>
    tpu.vector_store %arg9[%c0_23, %c0_24], %42 {strides = array<i32>} : memref<8x32xf32, #tpu.memory_space<vmem>>, vector<8x32xf32>,
    %c0_25 = arith.constant 0 : index
    %c0_26 = arith.constant 0 : index
    %44 = vector.load %arg10[%c0_25, %c0_26] : memref<8x128xf32, #tpu.memory_space<vmem>>, vector<8x128xf32>
    tpu.vector_store %arg10[%c0_25, %c0_26], %34 {strides = array<i32>} : memref<8x128xf32, #tpu.memory_space<vmem>>, vector<8x128xf32>,
    return
  }
  func.func @transform_0(%arg0: i32) -> (i32, i32) {
    %c0_i32 = arith.constant 0 : i32
    %c0_i32_0 = arith.constant 0 : i32
    return %arg0, %c0_i32 : i32, i32
  }
  func.func @transform_1(%arg0: i32) -> (i32, i32) {
    %c0_i32 = arith.constant 0 : i32
    %c0_i32_0 = arith.constant 0 : i32
    return %arg0, %c0_i32 : i32, i32
  }
  func.func @transform_2(%arg0: i32) -> (i32, i32) {
    %c0_i32 = arith.constant 0 : i32
    %c0_i32_0 = arith.constant 0 : i32
    %c0_i32_1 = arith.constant 0 : i32
    return %c0_i32, %c0_i32_0 : i32, i32
  }
  func.func @transform_3(%arg0: i32) -> (i32, i32) {
    %c0_i32 = arith.constant 0 : i32
    %c0_i32_0 = arith.constant 0 : i32
    %c0_i32_1 = arith.constant 0 : i32
    return %c0_i32, %c0_i32_0 : i32, i32
  }
  func.func @transform_4(%arg0: i32) -> (i32, i32) {
    %c0_i32 = arith.constant 0 : i32
    %c0_i32_0 = arith.constant 0 : i32
    %c0_i32_1 = arith.constant 0 : i32
    return %c0_i32, %c0_i32_0 : i32, i32
  }
  func.func @transform_5(%arg0: i32) -> (i32, i32) {
    %c0_i32 = arith.constant 0 : i32
    %c0_i32_0 = arith.constant 0 : i32
    %c0_i32_1 = arith.constant 0 : i32
    return %c0_i32, %c0_i32_0 : i32, i32
  }
  func.func @transform_6(%arg0: i32) -> (i32, i32) {
    %c0_i32 = arith.constant 0 : i32
    %c0_i32_0 = arith.constant 0 : i32
    %c0_i32_1 = arith.constant 0 : i32
    return %c0_i32, %c0_i32_0 : i32, i32
  }
  func.func @transform_7(%arg0: i32) -> (i32, i32) {
    %c0_i32 = arith.constant 0 : i32
    %c0_i32_0 = arith.constant 0 : i32
    %c0_i32_1 = arith.constant 0 : i32
    return %c0_i32, %c0_i32_0 : i32, i32
  }
  func.func @transform_8(%arg0: i32) -> (i32, i32) {
    %c0_i32 = arith.constant 0 : i32
    %c0_i32_0 = arith.constant 0 : i32
    return %arg0, %c0_i32 : i32, i32
  }
  func.func @transform_9(%arg0: i32) -> (i32, i32) {
    %c0_i32 = arith.constant 0 : i32
    %c0_i32_0 = arith.constant 0 : i32
    return %arg0, %c0_i32 : i32, i32
  }
}

module attributes {stable_mosaic.version = 11 : i64} {
  func.func @adapter_kernel(%arg0: i32, %arg1: memref<8x32xf32, #tpu.memory_space<vmem>>, %arg2: memref<8x32xf32, #tpu.memory_space<vmem>>, %arg3: memref<1x32xf32, #tpu.memory_space<vmem>>, %arg4: memref<1x32xf32, #tpu.memory_space<vmem>>, %arg5: memref<32x128xbf16, #tpu.memory_space<vmem>>, %arg6: memref<1x128xf32, #tpu.memory_space<vmem>>, %arg7: memref<128x32xbf16, #tpu.memory_space<vmem>>, %arg8: memref<1x32xf32, #tpu.memory_space<vmem>>, %arg9: memref<8x32xf32, #tpu.memory_space<vmem>>, %arg10: memref<8x128xf32, #tpu.memory_space<vmem>>) attributes {dimension_semantics = [#tpu.dimension_semantics<parallel>], iteration_bounds = array<i64: 2>, scalar_prefetch = 0 : i64, scratch_operands = 0 : i64, tpu.core_type = #tpu.core_type<tc>, window_params = [{transform_indices = @transform_0, window_bounds = array<i64: 8, 32>}, {transform_indices = @transform_1, window_bounds = array<i64: 8, 32>}, {pipeline_mode = #tpu.pipeline_mode<synchronous>, transform_indices = @transform_2, window_bounds = array<i64: 1, 32>}, {pipeline_mode = #tpu.pipeline_mode<synchronous>, transform_indices = @transform_3, window_bounds = array<i64: 1, 32>}, {pipeline_mode = #tpu.pipeline_mode<synchronous>, transform_indices = @transform_4, window_bounds = array<i64: 32, 128>}, {pipeline_mode = #tpu.pipeline_mode<synchronous>, transform_indices = @transform_5, window_bounds = array<i64: 1, 128>}, {pipeline_mode = #tpu.pipeline_mode<synchronous>, transform_indices = @transform_6, window_bounds = array<i64: 128, 32>}, {pipeline_mode = #tpu.pipeline_mode<synchronous>, transform_indices = @transform_7, window_bounds = array<i64: 1, 32>}, {transform_indices = @transform_8, window_bounds = array<i64: 8, 32>}, {transform_indices = @transform_9, window_bounds = array<i64: 8, 128>}]} {
    %c0 = arith.constant 0 : index
    %c0_0 = arith.constant 0 : index
    %0 = vector.load %arg1[%c0, %c0_0] : memref<8x32xf32, #tpu.memory_space<vmem>>, vector<8x32xf32>
    %cst = arith.constant dense<0.000000e+00> : vector<8xf32>
    %1 = vector.multi_reduction <add>, %0, %cst [1] : vector<8x32xf32> to vector<8xf32>
    %2 = vector.shape_cast %1 : vector<8xf32> to vector<8x1xf32>
    %cst_1 = arith.constant 3.200000e+01 : f32
    %3 = vector.broadcast %cst_1 : f32 to vector<8x1xf32>
    %4 = arith.divf %2, %3 : vector<8x1xf32>
    %5 = arith.mulf %0, %0 : vector<8x32xf32>
    %cst_2 = arith.constant dense<0.000000e+00> : vector<8xf32>
    %6 = vector.multi_reduction <add>, %5, %cst_2 [1] : vector<8x32xf32> to vector<8xf32>
    %7 = vector.shape_cast %6 : vector<8xf32> to vector<8x1xf32>
    %cst_3 = arith.constant 3.200000e+01 : f32
    %8 = vector.broadcast %cst_3 : f32 to vector<8x1xf32>
    %9 = arith.divf %7, %8 : vector<8x1xf32>
    %10 = arith.mulf %4, %4 : vector<8x1xf32>
    %11 = arith.subf %9, %10 : vector<8x1xf32>
    %cst_4 = arith.constant 0.000000e+00 : f32
    %12 = vector.broadcast %cst_4 : f32 to vector<8x1xf32>
    %13 = arith.maximumf %11, %12 : vector<8x1xf32>
    %14 = vector.broadcast %4 : vector<8x1xf32> to vector<8x32xf32>
    %15 = arith.subf %0, %14 : vector<8x32xf32>
    %cst_5 = arith.constant 9.99999974E-6 : f32
    %16 = vector.broadcast %cst_5 : f32 to vector<8x1xf32>
    %17 = arith.addf %13, %16 : vector<8x1xf32>
    %18 = math.rsqrt %17 : vector<8x1xf32>
    %19 = vector.broadcast %18 : vector<8x1xf32> to vector<8x32xf32>
    %20 = arith.mulf %15, %19 : vector<8x32xf32>
    %c0_6 = arith.constant 0 : index
    %c0_7 = arith.constant 0 : index
    %21 = vector.load %arg3[%c0_6, %c0_7] : memref<1x32xf32, #tpu.memory_space<vmem>>, vector<1x32xf32>
    %22 = vector.broadcast %21 : vector<1x32xf32> to vector<8x32xf32>
    %23 = arith.mulf %20, %22 : vector<8x32xf32>
    %c0_8 = arith.constant 0 : index
    %c0_9 = arith.constant 0 : index
    %24 = vector.load %arg4[%c0_8, %c0_9] : memref<1x32xf32, #tpu.memory_space<vmem>>, vector<1x32xf32>
    %25 = vector.broadcast %24 : vector<1x32xf32> to vector<8x32xf32>
    %26 = arith.addf %23, %25 : vector<8x32xf32>
    %27 = arith.truncf %26 : vector<8x32xf32> to vector<8x32xbf16>
    %c0_10 = arith.constant 0 : index
    %c0_11 = arith.constant 0 : index
    %28 = vector.load %arg5[%c0_10, %c0_11] : memref<32x128xbf16, #tpu.memory_space<vmem>>, vector<32x128xbf16>
    %cst_12 = arith.constant dense<0.000000e+00> : vector<8x128xf32>
    %29 = tpu.matmul %27, %28, %cst_12 {dimension_numbers = #tpu.dot_dimension_numbers<[1], [0], [0], [1], [0, 0, 1, 1], [], []>} : vector<8x32xbf16>, vector<32x128xbf16>, vector<8x128xf32> -> vector<8x128xf32>
    %c0_13 = arith.constant 0 : index
    %c0_14 = arith.constant 0 : index
    %30 = vector.load %arg6[%c0_13, %c0_14] : memref<1x128xf32, #tpu.memory_space<vmem>>, vector<1x128xf32>
    %31 = vector.broadcast %30 : vector<1x128xf32> to vector<8x128xf32>
    %32 = arith.addf %29, %31 : vector<8x128xf32>
    %cst_15 = arith.constant 0.000000e+00 : f32
    %33 = vector.broadcast %cst_15 : f32 to vector<8x128xf32>
    %34 = arith.maximumf %32, %33 : vector<8x128xf32>
    %35 = arith.truncf %34 : vector<8x128xf32> to vector<8x128xbf16>
    %c0_16 = arith.constant 0 : index
    %c0_17 = arith.constant 0 : index
    %36 = vector.load %arg7[%c0_16, %c0_17] : memref<128x32xbf16, #tpu.memory_space<vmem>>, vector<128x32xbf16>
    %cst_18 = arith.constant dense<0.000000e+00> : vector<8x32xf32>
    %37 = tpu.matmul %35, %36, %cst_18 {dimension_numbers = #tpu.dot_dimension_numbers<[1], [0], [0], [1], [0, 0, 1, 1], [], []>} : vector<8x128xbf16>, vector<128x32xbf16>, vector<8x32xf32> -> vector<8x32xf32>
    %c0_19 = arith.constant 0 : index
    %c0_20 = arith.constant 0 : index
    %38 = vector.load %arg8[%c0_19, %c0_20] : memref<1x32xf32, #tpu.memory_space<vmem>>, vector<1x32xf32>
    %39 = vector.broadcast %38 : vector<1x32xf32> to vector<8x32xf32>
    %40 = arith.addf %37, %39 : vector<8x32xf32>
    %c0_21 = arith.constant 0 : index
    %c0_22 = arith.constant 0 : index
    %41 = vector.load %arg2[%c0_21, %c0_22] : memref<8x32xf32, #tpu.memory_space<vmem>>, vector<8x32xf32>
    %42 = arith.addf %40, %41 : vector<8x32xf32>
    %c0_23 = arith.constant 0 : index
    %c0_24 = arith.constant 0 : index
    %43 = vector.load %arg9[%c0_23, %c0_24] : memref<8x32xf32, #tpu.memory_space<vmem>>, vector<8x32xf32>
    tpu.vector_store %arg9[%c0_23, %c0_24], %42 {strides = array<i32>} : memref<8x32xf32, #tpu.memory_space<vmem>>, vector<8x32xf32>,
    %c0_25 = arith.constant 0 : index
    %c0_26 = arith.constant 0 : index
    %44 = vector.load %arg10[%c0_25, %c0_26] : memref<8x128xf32, #tpu.memory_space<vmem>>, vector<8x128xf32>
    tpu.vector_store %arg10[%c0_25, %c0_26], %34 {strides = array<i32>} : memref<8x128xf32, #tpu.memory_space<vmem>>, vector<8x128xf32>,
    return
  }
  func.func @transform_0(%arg0: i32) -> (i32, i32) {
    %c0_i32 = arith.constant 0 : i32
    %c0_i32_0 = arith.constant 0 : i32
    return %arg0, %c0_i32 : i32, i32
  }
  func.func @transform_1(%arg0: i32) -> (i32, i32) {
    %c0_i32 = arith.constant 0 : i32
    %c0_i32_0 = arith.constant 0 : i32
    return %arg0, %c0_i32 : i32, i32
  }
  func.func @transform_2(%arg0: i32) -> (i32, i32) {
    %c0_i32 = arith.constant 0 : i32
    %c0_i32_0 = arith.constant 0 : i32
    %c0_i32_1 = arith.constant 0 : i32
    return %c0_i32, %c0_i32_0 : i32, i32
  }
  func.func @transform_3(%arg0: i32) -> (i32, i32) {
    %c0_i32 = arith.constant 0 : i32
    %c0_i32_0 = arith.constant 0 : i32
    %c0_i32_1 = arith.constant 0 : i32
    return %c0_i32, %c0_i32_0 : i32, i32
  }
  func.func @transform_4(%arg0: i32) -> (i32, i32) {
    %c0_i32 = arith.constant 0 : i32
    %c0_i32_0 = arith.constant 0 : i32
    %c0_i32_1 = arith.constant 0 : i32
    return %c0_i32, %c0_i32_0 : i32, i32
  }
  func.func @transform_5(%arg0: i32) -> (i32, i32) {
    %c0_i32 = arith.constant 0 : i32
    %c0_i32_0 = arith.constant 0 : i32
    %c0_i32_1 = arith.constant 0 : i32
    return %c0_i32, %c0_i32_0 : i32, i32
  }
  func.func @transform_6(%arg0: i32) -> (i32, i32) {
    %c0_i32 = arith.constant 0 : i32
    %c0_i32_0 = arith.constant 0 : i32
    %c0_i32_1 = arith.constant 0 : i32
    return %c0_i32, %c0_i32_0 : i32, i32
  }
  func.func @transform_7(%arg0: i32) -> (i32, i32) {
    %c0_i32 = arith.constant 0 : i32
    %c0_i32_0 = arith.constant 0 : i32
    %c0_i32_1 = arith.constant 0 : i32
    return %c0_i32, %c0_i32_0 : i32, i32
  }
  func.func @transform_8(%arg0: i32) -> (i32, i32) {
    %c0_i32 = arith.constant 0 : i32
    %c0_i32_0 = arith.constant 0 : i32
    return %arg0, %c0_i32 : i32, i32
  }
  func.func @transform_9(%arg0: i32) -> (i32, i32) {
    %c0_i32 = arith.constant 0 : i32
    %c0_i32_0 = arith.constant 0 : i32
    return %arg0, %c0_i32 : i32, i32
  }
}

</mosaic_0001>

<bundles_post_ra>
// kernel: _adapter_core.1
= control target key start
LH: loop header
LB: loop body
LE: loop exit
PB: predicated region body
PF: predicated region fallthrough
CT: control target
= control target key end

     0   :  { %s1179_s0 = inlined_call_operand.vmem [shape: f32[16,32], index: 0, kind: input, shape index: {}]   ;;  %s1180_s1 = inlined_call_operand.vmem [shape: f32[16,32], index: 1, kind: input, shape index: {}]   ;;  %s1181_s2 = inlined_call_operand.vmem [shape: f32[1,32], index: 2, kind: input, shape index: {}]   ;;  %s1182_s3 = inlined_call_operand.vmem [shape: f32[1,32], index: 3, kind: input, shape index: {}]   ;;  %s1183_s4 = inlined_call_operand.vmem [shape: bf16[32,128], index: 4, kind: input, shape index: {}]   ;;  %s1184_s5 = inlined_call_operand.vmem [shape: f32[1,128], index: 5, kind: input, shape index: {}]   ;;  %s1185_s6 = inlined_call_operand.vmem [shape: bf16[128,32], index: 6, kind: input, shape index: {}]   ;;  %s1186_s7 = inlined_call_operand.vmem [shape: f32[1,32], index: 7, kind: input, shape index: {}]   ;;  %s1187_s8 = inlined_call_operand.hbm [shape: f32[16,32], index: 8, kind: output, shape index: {0}]   ;;  %s1188_s9 = inlined_call_operand.hbm [shape: f32[16,128], index: 9, kind: output, shape index: {1}]  }
   0x1   :  { %1192 = sst [smem:[#allocation8_spill]] %s1179_s0 }
   0x2   :  { %1193 = sst [smem:[#allocation9_spill]] %s1181_s2 }
   0x3   :  { %15 = vsyncpa [#allocation3], 0 }
   0x4   :  { %17 = vsyncpa [#allocation3 + $0x1], 0 }
   0x5   :  { %18 = vsyncpa [#allocation5], 0 }
   0x6   :  { %20 = vsyncpa [#allocation5 + $0x1], 0  ;;  %s988_s30 = smov 0   ;;  %s990_s10 = smov 0  }
   0x7   :  { %s992_s11 = smov 0   ;;  %s994_s12 = smov 0  }
   0x8 LB: > { %s1009_s13 = sadd.s32 4294967295, %s932_s12   ;;  %s711_s14 = sadd.s32 4294967294, %s932_s12   ;;  %s932_s12 = sphi %s994_s12, %s1204_s12   ;;  %s928_s11 = sphi %s992_s11, %s1203_s11   ;;  %s924_s10 = sphi %s990_s10, %s1202_s10   ;;  %s920_s30 = sphi %s988_s30, %s1201_s30  }
   0x9   : > { %s1013_s15 = sadd.s32 1, %s932_s12   ;;  %s211_s16 = sadd.s32 1, %s928_s11 }
   0xa   : > { %s208_s17 = ssub.s32 %s932_s12, %s1013_s15  ;;  %p221_p0 = scmp.ne.s32.totalorder %s928_s11, %s924_s10 }
   0xb   : > { %p209_p1 = scmp.eq.s32.totalorder %s208_s17, 0  ;;  %p222_p2 = scmp.eq.s32.totalorder %s1009_s13, 1 }
   0xc   : > { %p227_p3 = scmp.ne.s32.totalorder %s924_s10, %s920_s30  ;;  %p228_p4 = scmp.eq.s32.totalorder %s711_s14, 1 }
   0xd   : > { %s1024_s18 = scalar_select %p209_p1, %s928_s11, %s211_s16  }
   0xe   : > { %p1026_p5 = por %p222_p2, %p221_p0  ;;  %p1030_p6 = por %p228_p4, %p227_p3 }
   0xf   : > { %p714_p7 = scmp.ge.s32.totalorder %s932_s12, 1  ;;  %p304_p8 = scmp.lt.s32.totalorder %s932_s12, 3 }
  0x11   : > { %p305_p9 = pnand %p714_p7, %p304_p8 }
  0x12   : > { %p348_p10 = scmp.lt.s32.totalorder (!%p305_p9), %s1009_s13, 1  ;;  %vm358_vm0 = vcmask (!%p305_p9), 261120   ;;  %s1196_s0 = sld [smem:[#allocation8_spill]] (!%p305_p9)  ;;  %v826_v4 = vld [vmem:[%s1183_s4] sm:$0xff] (!%p305_p9)   ;;  %v934_v5 = vmov (!%p305_p9), 0.0   ;;  %vm935_vm1 = vmmov (!%p305_p9), 0  }
  0x13   : > { %308 = sbr.rel (%p305_p9) target bundleno = 653 (0x28d), region = 52  ;;  %752 = vmatprep.subr.bf16.mxu0 (!%p305_p9), %v934_v5  ;;  %756 = vmatprep.mubr.msk.bf16.mxu0 (!%p305_p9), %vm935_vm1, %v934_v5  ;;  %v827_v6 = vld [vmem:[%s1183_s4 + $0x8] sm:$0xff] (!%p305_p9)   ;;  %v828_v7 = vld [vmem:[%s1185_s6] sm:$0xff] (!%p305_p9)   ;;  %v830_v9 = vld [vmem:[%s1185_s6 + $0x10] sm:$0xff] (!%p305_p9)   ;;  %s1197_s2 = sld [smem:[#allocation9_spill]] (!%p305_p9) }
  0x14   : > { %753 = vmatpush3.bf16.msra.mxu0 (!%p305_p9), %v826_v4  ;;  %760 = vmatprep.subr.bf16.mxu1 (!%p305_p9), %v934_v5  ;;  %v829_v8 = vld [vmem:[%s1185_s6 + $0x8] sm:$0xff] (!%p305_p9)   ;;  %v831_v10 = vld [vmem:[%s1185_s6 + $0x18] sm:$0xff] (!%p305_p9)   ;;  %v832_v11 = vld [vmem:[%s1185_s6 + $0x20] sm:$0xff] (!%p305_p9)   ;;  %s1086_s14 = sand.u32 (!%p305_p9), 1, %s924_s10  }
  0x15   : > { %754 = vmatprep.subr.bf16.mxu0 (!%p305_p9), %v934_v5  ;;  %776 = vmatprep.mubr.msk.bf16.mxu1 (!%p305_p9), %vm935_vm1, %v934_v5  ;;  %v833_v12 = vld [vmem:[%s1185_s6 + $0x28] sm:$0xff] (!%p305_p9)   ;;  %v720_v25 = vld [vmem:[%s1182_s3] ss:$0 sm:$0xff] (!%p305_p9)  ;;  %v834_v29 = vld [vmem:[%s1185_s6 + $0x30] sm:$0xff] (!%p305_p9)   ;;  %s1190_s23 = sshll.u32 (!%p305_p9), %s1086_s14, 3  ;;  %s582_s16 = scalar_lea.sflag (!%p305_p9), [#allocation5], %s1086_s14 }
  0x16   : > { %761 = vmatpush3.bf16.msra.mxu1 (!%p305_p9), %v828_v7  ;;  %v835_v30 = vld [vmem:[%s1185_s6 + $0x38] sm:$0xff] (!%p305_p9)   ;;  %v721_v31 = vld [vmem:[%s1184_s5] ss:$0 sm:$0xff] (!%p305_p9)  ;;  %s347_s24 = scalar_lea.vmem (!%p305_p9), [#allocation4], %s1190_s23 }
  0x17   : > { %762 = vmatprep.subr.bf16.mxu1 (!%p305_p9), %v934_v5  ;;  %s608_s29 = sshll.u32 (!%p305_p9), %s347_s24, 4  ;;  %s609_s29 = int_to_ptr.vmem [resolvable:$true] %s608_s29 }
  0x18   : > { %755 = vmatpush3.bf16.msra.mxu0 (!%p305_p9), %v827_v6  ;;  %s838_s17 = scalar_lea.vmem (!%p305_p9), %s609_s29, 128 }
  0x19   : > { %v719_v23 = vld [vmem:[%s1197_s2] ss:$0 sm:$0xff] (!%p305_p9)  ;;  %p839_p11 = scmp.ne.s32.totalorder (!%p305_p9), %s609_s29, %s838_s17 }
  0x1a   : > { %s1038_s21 = scalar_select %p348_p10, %s1009_s13, 1  ;;  %763 = vmatpush3.bf16.msra.mxu1 %v829_v8 }
  0x1b   : > { %764 = vmatprep.subr.bf16.mxu1 %v934_v5  ;;  %p840_p12 = pnand %p839_p11, %p1026_p5 }
  0x1c   : > { %s1189_s22 = sshll.u32 %s1038_s21, 3 }
  0x1d   : > { %s351_s25 = scalar_lea.vmem %s1196_s0, %s1189_s22  ;;  %p841_p13 = pneg %p840_p12 }
  0x1e   : > { %v357_v0 = vld [vmem:[%s351_s25] sm:$0xff]  ;;  %765 = vmatpush3.bf16.msra.mxu1 %v830_v9  ;;  %s1191_s25 = sshll.u32 %s1009_s13, 7  ;;  %s936_s22 = smov [#allocation4]  }
  0x1f   : > { %v359_v1 = vsel %vm358_vm0, %v357_v0, 0.0  ;;  %v364_v2 = vmul.f32 %v357_v0, %v357_v0  ;;  %766 = vmatprep.subr.bf16.mxu1 %v934_v5  ;;  %s1100_s28 = scalar_lea.hbm %s1188_s9, %s1191_s25  ;;  %s842_s0 = sshll.u32 %s936_s22, 4  ;;  %s843_s0 = int_to_ptr.vmem [resolvable:$false] %s842_s0 }
  0x20   : > { %360 = vadd.xlane.f32.xlu0 %v359_v1  ;;  %s844_s23 = scalar_lea.vmem %s843_s0, 256  ;;  %p845_p0 = scmp.lt.s32.totalorder %s609_s29, %s843_s0 }
  0x21   : > { %v365_v3 = vsel %vm358_vm0, %v364_v2, 0.0  ;;  %p846_p1 = scmp.lt.s32.totalorder %s844_s23, %s838_s17 }
  0x22   : > { %767 = vmatpush3.bf16.msra.mxu1 %v831_v10 }
  0x23   : > { %768 = vmatprep.subr.bf16.mxu1 %v934_v5  ;;  %p847_p2 = por %p846_p1, %p845_p0 }
  0x24   : > { %366 = vadd.xlane.f32.xlu0 %v365_v3 }
  0x25   : > { %p848_p3 = pnand %p847_p2, %p841_p13 }
  0x26   : > { %769 = vmatpush3.bf16.msra.mxu1 %v832_v11 }
  0x27   : > { %770 = vmatprep.subr.bf16.mxu1 %v934_v5 }
  0x2a   : > { %771 = vmatpush3.bf16.msra.mxu1 %v833_v12 }
  0x2b   : > { %772 = vmatprep.subr.bf16.mxu1 %v934_v5 }
  0x2e   : > { %773 = vmatpush3.bf16.msra.mxu1 %v834_v29 }
  0x2f   : > { %774 = vmatprep.subr.bf16.mxu1 %v934_v5 }
  0x32   : > { %775 = vmatpush3.bf16.msra.mxu1 %v835_v30 }
  0xad   : > { %v361_v13 = vpop.xlane.xlu0 %360 }
  0xae   : > { %v363_v14 = vmul.f32 0.03125, %v361_v13 }
  0xb0   : > { %v369_v16 = vmul.f32 %v363_v14, %v363_v14  ;;  %v372_v21 = vsub.f32 %v357_v0, %v363_v14 }
  0xb1   : > { %v367_v15 = vpop.xlane.xlu0 %366 }
  0xb2   : > { %v368_v17 = vmul.f32 0.03125, %v367_v15 }
  0xb4   : > { %v370_v18 = vsub.f32 %v368_v17, %v369_v16 }
  0xb6   : > { %v371_v19 = vmax.f32 %v370_v18, 0.0 }
  0xb8   : > { %v373_v20 = vadd.f32 1e-05, %v371_v19 }
  0xba   : > { %836 = vrsqrt.f32 %v373_v20 }
  0xc4   : > { %v837_v22 = vpop.eup %836 }
  0xc5   : > { %v375_v24 = vmul.f32 %v837_v22, %v372_v21 }
  0xc7   : > { %v383_v26 = vmul.f32 %v719_v23, %v375_v24 }
  0xc9   : > { %v391_v27 = vadd.f32 %v720_v25, %v383_v26 }
  0xcb   : > { %v392_v28 = vpack.c.bf16 %v391_v27, %v391_v27 }
  0xcd   : > { %757 = vmatmul.mubr.msk.bf16.vlgmr.msra.gmra.mrb[0].mxu0 %vm358_vm0, %v392_v28 }
 0x1a0   : > { %v453_v32 = vpop.f32.mrb[0].mxu0 }
 0x1a1   : > { %v454_v33 = vadd.f32 %v721_v31, %v453_v32  ;;  %v758_v34 = vpop.f32.mrb[1].mxu0 }
 0x1a2   : > { %v456_v35 = vpop.f32.mrb[2].mxu0 }
 0x1a3   : > { %v459_v36 = vmax.f32 %v454_v33, 0.0  ;;  %v759_v37 = vpop.f32.mrb[3].mxu0 }
 0x1a5   : > { %v460_v38 = vpack.c.bf16 %v459_v36, %v459_v36  ;;  %575 = vst [vmem:[%s347_s24] sm:$0xff] %v459_v36 }
 0x1a7   : > { %777 = vmatmul.mubr.bf16.vlgmr.msra.gmra.mrb[0].mxu1 %v460_v38 }
 0x1a8   : > { %851 = shalt.err (!%p848_p3)
}
 0x1a9   : > { %s852_s24 = scalar_lea.hbm %s1100_s28, 128  ;;  %s856_s22 = scalar_lea.hbm %s1188_s9, 256 }
 0x1aa   : > { %p853_p4 = scmp.ne.s32.totalorder %s1100_s28, %s852_s24  ;;  %p857_p9 = scmp.lt.u32.totalorder %s1100_s28, %s1188_s9 }
 0x1ab   : > { %p858_p10 = scmp.lt.u32.totalorder %s856_s22, %s852_s24  ;;  %p860_p12 = scmp.lt.u32.totalorder %s852_s24, %s1100_s28 }
 0x1ac   : > { %p854_p7 = pnand %p853_p4, %p1026_p5 }
 0x1ad   : > { %p859_p11 = por %p858_p10, %p857_p9 }
 0x1ae   : > { %p855_p8 = pneg %p854_p7 }
 0x1af   : > { %p861_p13 = por %p860_p12, %p859_p11 }
 0x1b1   : > { %p862_p0 = pnand %p861_p13, %p855_p8 }
 0x1b3   : > { %865 = shalt.err (!%p862_p0)
}
 0x1b4   : > { %781 = dma.vmem_to_hbm [thread:$0]  (%p1026_p5), %s609_s29, 128, %s1100_s28, %s582_s16   ;;  %v725_v39 = vld [vmem:[%s1186_s7] ss:$0 sm:$0xff] }
 0x1b5   : > { %s1198_s23 = sshll.u32 %s1038_s21, 3  ;;  %s1199_s24 = sshll.u32 %s1086_s14, 3 }
 0x1b6   : > { %s355_s25 = scalar_lea.vmem %s1180_s1, %s1198_s23  ;;  %s340_s0 = scalar_lea.vmem [#allocation2], %s1199_s24 }
 0x1b7   : > { %v572_v41 = vld [vmem:[%s355_s25] sm:$0xff]  ;;  %s595_s2 = sshll.u32 %s340_s0, 4  ;;  %s1200_s21 = sshll.u32 %s1009_s13, 7  ;;  %s1137_s2 = int_to_ptr.vmem [resolvable:$true] %s595_s2 }
 0x1b8   : > { %s1135_s16 = scalar_lea.hbm %s1187_s8, %s1200_s21  ;;  %s577_s23 = scalar_lea.sflag [#allocation3], %s1086_s14 }
 0x1b9   : > { %s866_s17 = scalar_lea.vmem %s1137_s2, 128  ;;  %s937_s26 = smov [#allocation2]  }
 0x1ba   : > { %p867_p1 = scmp.ne.s32.totalorder %s1137_s2, %s866_s17  ;;  %s870_s13 = sshll.u32 %s937_s26, 4  ;;  %s871_s13 = int_to_ptr.vmem [resolvable:$false] %s870_s13 }
 0x1bb   : > { %s872_s25 = scalar_lea.vmem %s871_s13, 256  ;;  %p873_p4 = scmp.lt.s32.totalorder %s1137_s2, %s871_s13 }
 0x1bc   : > { %p868_p2 = pnand %p867_p1, %p1026_p5  ;;  %p874_p7 = scmp.lt.s32.totalorder %s872_s25, %s866_s17 }
 0x1be   : > { %p869_p3 = pneg %p868_p2  ;;  %p875_p8 = por %p874_p7, %p873_p4 }
 0x1c0   : > { %p876_p9 = pnand %p875_p8, %p869_p3 }
 0x27a   : > { %v566_v40 = vpop.f32.mrb[0].mxu1 }
 0x27b   : > { %v567_v42 = vadd.f32 %v725_v39, %v566_v40  ;;  %v778_v43 = vpop.f32.mrb[1].mxu1 }
 0x27c   : > { %v569_v44 = vpop.f32.mrb[2].mxu1 }
 0x27d   : > { %v573_v45 = vadd.f32 %v572_v41, %v567_v42  ;;  %v779_v46 = vpop.f32.mrb[3].mxu1 }
 0x27f   : > { %574 = vst.msk [vmem:[%s340_s0] sm:$0xff] %vm358_vm0, %v573_v45 }
 0x280   : > { %879 = shalt.err (!%p876_p9)
}
 0x281   : > { %s880_s14 = scalar_lea.hbm %s1135_s16, 128  ;;  %s884_s24 = scalar_lea.hbm %s1187_s8, 256 }
 0x282   : > { %p881_p10 = scmp.ne.s32.totalorder %s1135_s16, %s880_s14  ;;  %p885_p13 = scmp.lt.u32.totalorder %s1135_s16, %s1187_s8 }
 0x283   : > { %p886_p0 = scmp.lt.u32.totalorder %s884_s24, %s880_s14  ;;  %p888_p2 = scmp.lt.u32.totalorder %s880_s14, %s1135_s16 }
 0x284   : > { %p882_p11 = pnand %p881_p10, %p1026_p5 }
 0x285   : > { %p887_p1 = por %p886_p0, %p885_p13 }
 0x286   : > { %p883_p12 = pneg %p882_p11 }
 0x287   : > { %p889_p3 = por %p888_p2, %p887_p1 }
 0x289   : > { %p890_p4 = pnand %p889_p3, %p883_p12 }
 0x28b   : > { %893 = shalt.err (!%p890_p4)
}
 0x28c   : > { %780 = dma.vmem_to_hbm [thread:$0]  (%p1026_p5), %s1137_s2, 128, %s1135_s16, %s577_s23  }
 0x28d PF: > { %p791_p7 = scmp.ge.s32.totalorder %s932_s12, 2  ;;  %s620_s28 = sand.u32 1, %s920_s30  }
 0x28e   : > { %s621_s29 = scalar_lea.sflag [#allocation3], %s620_s28 }
 0x28f   : > { %p785_p8 = pnand %p791_p7, %p1030_p6 }
 0x291   : > { %911 = dma.done.wait (!%p785_p8), %s621_s29, 128  }
 0x292   : > { %913 = vsyncadd (!%p785_p8), %s621_s29, 4294967168  ;;  %s630_s17 = scalar_lea.sflag [#allocation5], %s620_s28 }
 0x293   : > { %915 = dma.done.wait (!%p785_p8), %s630_s17, 128  }
 0x294   : > { %917 = vsyncadd (!%p785_p8), %s630_s17, 4294967168  ;;  %p23_p5 = scmp.ge.s32.totalorder %s1013_s15, 4   ;;  %s1201_s30 = smov %s924_s10 }
 0x295   : > { %s1202_s10 = smov %s928_s11  ;;  %s1203_s11 = smov %s1024_s18 }
 0x296   : > { %s1204_s12 = smov %s1013_s15  ;;  %25 = sbr.rel (!%p23_p5) target bundleno = 8 (0x8), region = 107 }
 0x29d   :  { %635 = vsyncpa [#allocation3], 1 }
 0x29e   :  { %637 = vsyncpa [#allocation3 + $0x1], 1 }
 0x29f   :  { %638 = vsyncpa [#allocation5], 1 }
 0x2a0   :  { %640 = vsyncpa [#allocation5 + $0x1], 1 }

// kernel: _adapter_core.1
= control target key start
LH: loop header
LB: loop body
LE: loop exit
PB: predicated region body
PF: predicated region fallthrough
CT: control target
= control target key end

     0   :  { %s1179_s0 = inlined_call_operand.vmem [shape: f32[16,32], index: 0, kind: input, shape index: {}]   ;;  %s1180_s1 = inlined_call_operand.vmem [shape: f32[16,32], index: 1, kind: input, shape index: {}]   ;;  %s1181_s2 = inlined_call_operand.vmem [shape: f32[1,32], index: 2, kind: input, shape index: {}]   ;;  %s1182_s3 = inlined_call_operand.vmem [shape: f32[1,32], index: 3, kind: input, shape index: {}]   ;;  %s1183_s4 = inlined_call_operand.vmem [shape: bf16[32,128], index: 4, kind: input, shape index: {}]   ;;  %s1184_s5 = inlined_call_operand.vmem [shape: f32[1,128], index: 5, kind: input, shape index: {}]   ;;  %s1185_s6 = inlined_call_operand.vmem [shape: bf16[128,32], index: 6, kind: input, shape index: {}]   ;;  %s1186_s7 = inlined_call_operand.vmem [shape: f32[1,32], index: 7, kind: input, shape index: {}]   ;;  %s1187_s8 = inlined_call_operand.hbm [shape: f32[16,32], index: 8, kind: output, shape index: {0}]   ;;  %s1188_s9 = inlined_call_operand.hbm [shape: f32[16,128], index: 9, kind: output, shape index: {1}]  }
   0x1   :  { %1192 = sst [smem:[#allocation8_spill]] %s1179_s0 }
   0x2   :  { %1193 = sst [smem:[#allocation9_spill]] %s1181_s2 }
   0x3   :  { %15 = vsyncpa [#allocation3], 0 }
   0x4   :  { %17 = vsyncpa [#allocation3 + $0x1], 0 }
   0x5   :  { %18 = vsyncpa [#allocation5], 0 }
   0x6   :  { %20 = vsyncpa [#allocation5 + $0x1], 0  ;;  %s988_s30 = smov 0   ;;  %s990_s10 = smov 0  }
   0x7   :  { %s992_s11 = smov 0   ;;  %s994_s12 = smov 0  }
   0x8 LB: > { %s1009_s13 = sadd.s32 4294967295, %s932_s12   ;;  %s711_s14 = sadd.s32 4294967294, %s932_s12   ;;  %s932_s12 = sphi %s994_s12, %s1204_s12   ;;  %s928_s11 = sphi %s992_s11, %s1203_s11   ;;  %s924_s10 = sphi %s990_s10, %s1202_s10   ;;  %s920_s30 = sphi %s988_s30, %s1201_s30  }
   0x9   : > { %s1013_s15 = sadd.s32 1, %s932_s12   ;;  %s211_s16 = sadd.s32 1, %s928_s11 }
   0xa   : > { %s208_s17 = ssub.s32 %s932_s12, %s1013_s15  ;;  %p221_p0 = scmp.ne.s32.totalorder %s928_s11, %s924_s10 }
   0xb   : > { %p209_p1 = scmp.eq.s32.totalorder %s208_s17, 0  ;;  %p222_p2 = scmp.eq.s32.totalorder %s1009_s13, 1 }
   0xc   : > { %p227_p3 = scmp.ne.s32.totalorder %s924_s10, %s920_s30  ;;  %p228_p4 = scmp.eq.s32.totalorder %s711_s14, 1 }
   0xd   : > { %s1024_s18 = scalar_select %p209_p1, %s928_s11, %s211_s16  }
   0xe   : > { %p1026_p5 = por %p222_p2, %p221_p0  ;;  %p1030_p6 = por %p228_p4, %p227_p3 }
   0xf   : > { %p714_p7 = scmp.ge.s32.totalorder %s932_s12, 1  ;;  %p304_p8 = scmp.lt.s32.totalorder %s932_s12, 3 }
  0x11   : > { %p305_p9 = pnand %p714_p7, %p304_p8 }
  0x12   : > { %p348_p10 = scmp.lt.s32.totalorder (!%p305_p9), %s1009_s13, 1  ;;  %vm358_vm0 = vcmask (!%p305_p9), 261120   ;;  %s1196_s0 = sld [smem:[#allocation8_spill]] (!%p305_p9)  ;;  %v826_v4 = vld [vmem:[%s1183_s4] sm:$0xff] (!%p305_p9)   ;;  %v934_v5 = vmov (!%p305_p9), 0.0   ;;  %vm935_vm1 = vmmov (!%p305_p9), 0  }
  0x13   : > { %308 = sbr.rel (%p305_p9) target bundleno = 653 (0x28d), region = 52  ;;  %752 = vmatprep.subr.bf16.mxu0 (!%p305_p9), %v934_v5  ;;  %756 = vmatprep.mubr.msk.bf16.mxu0 (!%p305_p9), %vm935_vm1, %v934_v5  ;;  %v827_v6 = vld [vmem:[%s1183_s4 + $0x8] sm:$0xff] (!%p305_p9)   ;;  %v828_v7 = vld [vmem:[%s1185_s6] sm:$0xff] (!%p305_p9)   ;;  %v830_v9 = vld [vmem:[%s1185_s6 + $0x10] sm:$0xff] (!%p305_p9)   ;;  %s1197_s2 = sld [smem:[#allocation9_spill]] (!%p305_p9) }
  0x14   : > { %753 = vmatpush3.bf16.msra.mxu0 (!%p305_p9), %v826_v4  ;;  %760 = vmatprep.subr.bf16.mxu1 (!%p305_p9), %v934_v5  ;;  %v829_v8 = vld [vmem:[%s1185_s6 + $0x8] sm:$0xff] (!%p305_p9)   ;;  %v831_v10 = vld [vmem:[%s1185_s6 + $0x18] sm:$0xff] (!%p305_p9)   ;;  %v832_v11 = vld [vmem:[%s1185_s6 + $0x20] sm:$0xff] (!%p305_p9)   ;;  %s1086_s14 = sand.u32 (!%p305_p9), 1, %s924_s10  }
  0x15   : > { %754 = vmatprep.subr.bf16.mxu0 (!%p305_p9), %v934_v5  ;;  %776 = vmatprep.mubr.msk.bf16.mxu1 (!%p305_p9), %vm935_vm1, %v934_v5  ;;  %v833_v12 = vld [vmem:[%s1185_s6 + $0x28] sm:$0xff] (!%p305_p9)   ;;  %v720_v25 = vld [vmem:[%s1182_s3] ss:$0 sm:$0xff] (!%p305_p9)  ;;  %v834_v29 = vld [vmem:[%s1185_s6 + $0x30] sm:$0xff] (!%p305_p9)   ;;  %s1190_s23 = sshll.u32 (!%p305_p9), %s1086_s14, 3  ;;  %s582_s16 = scalar_lea.sflag (!%p305_p9), [#allocation5], %s1086_s14 }
  0x16   : > { %761 = vmatpush3.bf16.msra.mxu1 (!%p305_p9), %v828_v7  ;;  %v835_v30 = vld [vmem:[%s1185_s6 + $0x38] sm:$0xff] (!%p305_p9)   ;;  %v721_v31 = vld [vmem:[%s1184_s5] ss:$0 sm:$0xff] (!%p305_p9)  ;;  %s347_s24 = scalar_lea.vmem (!%p305_p9), [#allocation4], %s1190_s23 }
  0x17   : > { %762 = vmatprep.subr.bf16.mxu1 (!%p305_p9), %v934_v5  ;;  %s608_s29 = sshll.u32 (!%p305_p9), %s347_s24, 4  ;;  %s609_s29 = int_to_ptr.vmem [resolvable:$true] %s608_s29 }
  0x18   : > { %755 = vmatpush3.bf16.msra.mxu0 (!%p305_p9), %v827_v6  ;;  %s838_s17 = scalar_lea.vmem (!%p305_p9), %s609_s29, 128 }
  0x19   : > { %v719_v23 = vld [vmem:[%s1197_s2] ss:$0 sm:$0xff] (!%p305_p9)  ;;  %p839_p11 = scmp.ne.s32.totalorder (!%p305_p9), %s609_s29, %s838_s17 }
  0x1a   : > { %s1038_s21 = scalar_select %p348_p10, %s1009_s13, 1  ;;  %763 = vmatpush3.bf16.msra.mxu1 %v829_v8 }
  0x1b   : > { %764 = vmatprep.subr.bf16.mxu1 %v934_v5  ;;  %p840_p12 = pnand %p839_p11, %p1026_p5 }
  0x1c   : > { %s1189_s22 = sshll.u32 %s1038_s21, 3 }
  0x1d   : > { %s351_s25 = scalar_lea.vmem %s1196_s0, %s1189_s22  ;;  %p841_p13 = pneg %p840_p12 }
  0x1e   : > { %v357_v0 = vld [vmem:[%s351_s25] sm:$0xff]  ;;  %765 = vmatpush3.bf16.msra.mxu1 %v830_v9  ;;  %s1191_s25 = sshll.u32 %s1009_s13, 7  ;;  %s936_s22 = smov [#allocation4]  }
  0x1f   : > { %v359_v1 = vsel %vm358_vm0, %v357_v0, 0.0  ;;  %v364_v2 = vmul.f32 %v357_v0, %v357_v0  ;;  %766 = vmatprep.subr.bf16.mxu1 %v934_v5  ;;  %s1100_s28 = scalar_lea.hbm %s1188_s9, %s1191_s25  ;;  %s842_s0 = sshll.u32 %s936_s22, 4  ;;  %s843_s0 = int_to_ptr.vmem [resolvable:$false] %s842_s0 }
  0x20   : > { %360 = vadd.xlane.f32.xlu0 %v359_v1  ;;  %s844_s23 = scalar_lea.vmem %s843_s0, 256  ;;  %p845_p0 = scmp.lt.s32.totalorder %s609_s29, %s843_s0 }
  0x21   : > { %v365_v3 = vsel %vm358_vm0, %v364_v2, 0.0  ;;  %p846_p1 = scmp.lt.s32.totalorder %s844_s23, %s838_s17 }
  0x22   : > { %767 = vmatpush3.bf16.msra.mxu1 %v831_v10 }
  0x23   : > { %768 = vmatprep.subr.bf16.mxu1 %v934_v5  ;;  %p847_p2 = por %p846_p1, %p845_p0 }
  0x24   : > { %366 = vadd.xlane.f32.xlu0 %v365_v3 }
  0x25   : > { %p848_p3 = pnand %p847_p2, %p841_p13 }
  0x26   : > { %769 = vmatpush3.bf16.msra.mxu1 %v832_v11 }
  0x27   : > { %770 = vmatprep.subr.bf16.mxu1 %v934_v5 }
  0x2a   : > { %771 = vmatpush3.bf16.msra.mxu1 %v833_v12 }
  0x2b   : > { %772 = vmatprep.subr.bf16.mxu1 %v934_v5 }
  0x2e   : > { %773 = vmatpush3.bf16.msra.mxu1 %v834_v29 }
  0x2f   : > { %774 = vmatprep.subr.bf16.mxu1 %v934_v5 }
  0x32   : > { %775 = vmatpush3.bf16.msra.mxu1 %v835_v30 }
  0xad   : > { %v361_v13 = vpop.xlane.xlu0 %360 }
  0xae   : > { %v363_v14 = vmul.f32 0.03125, %v361_v13 }
  0xb0   : > { %v369_v16 = vmul.f32 %v363_v14, %v363_v14  ;;  %v372_v21 = vsub.f32 %v357_v0, %v363_v14 }
  0xb1   : > { %v367_v15 = vpop.xlane.xlu0 %366 }
  0xb2   : > { %v368_v17 = vmul.f32 0.03125, %v367_v15 }
  0xb4   : > { %v370_v18 = vsub.f32 %v368_v17, %v369_v16 }
  0xb6   : > { %v371_v19 = vmax.f32 %v370_v18, 0.0 }
  0xb8   : > { %v373_v20 = vadd.f32 1e-05, %v371_v19 }
  0xba   : > { %836 = vrsqrt.f32 %v373_v20 }
  0xc4   : > { %v837_v22 = vpop.eup %836 }
  0xc5   : > { %v375_v24 = vmul.f32 %v837_v22, %v372_v21 }
  0xc7   : > { %v383_v26 = vmul.f32 %v719_v23, %v375_v24 }
  0xc9   : > { %v391_v27 = vadd.f32 %v720_v25, %v383_v26 }
  0xcb   : > { %v392_v28 = vpack.c.bf16 %v391_v27, %v391_v27 }
  0xcd   : > { %757 = vmatmul.mubr.msk.bf16.vlgmr.msra.gmra.mrb[0].mxu0 %vm358_vm0, %v392_v28 }
 0x1a0   : > { %v453_v32 = vpop.f32.mrb[0].mxu0 }
 0x1a1   : > { %v454_v33 = vadd.f32 %v721_v31, %v453_v32  ;;  %v758_v34 = vpop.f32.mrb[1].mxu0 }
 0x1a2   : > { %v456_v35 = vpop.f32.mrb[2].mxu0 }
 0x1a3   : > { %v459_v36 = vmax.f32 %v454_v33, 0.0  ;;  %v759_v37 = vpop.f32.mrb[3].mxu0 }
 0x1a5   : > { %v460_v38 = vpack.c.bf16 %v459_v36, %v459_v36  ;;  %575 = vst [vmem:[%s347_s24] sm:$0xff] %v459_v36 }
 0x1a7   : > { %777 = vmatmul.mubr.bf16.vlgmr.msra.gmra.mrb[0].mxu1 %v460_v38 }
 0x1a8   : > { %851 = shalt.err (!%p848_p3)
}
 0x1a9   : > { %s852_s24 = scalar_lea.hbm %s1100_s28, 128  ;;  %s856_s22 = scalar_lea.hbm %s1188_s9, 256 }
 0x1aa   : > { %p853_p4 = scmp.ne.s32.totalorder %s1100_s28, %s852_s24  ;;  %p857_p9 = scmp.lt.u32.totalorder %s1100_s28, %s1188_s9 }
 0x1ab   : > { %p858_p10 = scmp.lt.u32.totalorder %s856_s22, %s852_s24  ;;  %p860_p12 = scmp.lt.u32.totalorder %s852_s24, %s1100_s28 }
 0x1ac   : > { %p854_p7 = pnand %p853_p4, %p1026_p5 }
 0x1ad   : > { %p859_p11 = por %p858_p10, %p857_p9 }
 0x1ae   : > { %p855_p8 = pneg %p854_p7 }
 0x1af   : > { %p861_p13 = por %p860_p12, %p859_p11 }
 0x1b1   : > { %p862_p0 = pnand %p861_p13, %p855_p8 }
 0x1b3   : > { %865 = shalt.err (!%p862_p0)
}
 0x1b4   : > { %781 = dma.vmem_to_hbm [thread:$0]  (%p1026_p5), %s609_s29, 128, %s1100_s28, %s582_s16   ;;  %v725_v39 = vld [vmem:[%s1186_s7] ss:$0 sm:$0xff] }
 0x1b5   : > { %s1198_s23 = sshll.u32 %s1038_s21, 3  ;;  %s1199_s24 = sshll.u32 %s1086_s14, 3 }
 0x1b6   : > { %s355_s25 = scalar_lea.vmem %s1180_s1, %s1198_s23  ;;  %s340_s0 = scalar_lea.vmem [#allocation2], %s1199_s24 }
 0x1b7   : > { %v572_v41 = vld [vmem:[%s355_s25] sm:$0xff]  ;;  %s595_s2 = sshll.u32 %s340_s0, 4  ;;  %s1200_s21 = sshll.u32 %s1009_s13, 7  ;;  %s1137_s2 = int_to_ptr.vmem [resolvable:$true] %s595_s2 }
 0x1b8   : > { %s1135_s16 = scalar_lea.hbm %s1187_s8, %s1200_s21  ;;  %s577_s23 = scalar_lea.sflag [#allocation3], %s1086_s14 }
 0x1b9   : > { %s866_s17 = scalar_lea.vmem %s1137_s2, 128  ;;  %s937_s26 = smov [#allocation2]  }
 0x1ba   : > { %p867_p1 = scmp.ne.s32.totalorder %s1137_s2, %s866_s17  ;;  %s870_s13 = sshll.u32 %s937_s26, 4  ;;  %s871_s13 = int_to_ptr.vmem [resolvable:$false] %s870_s13 }
 0x1bb   : > { %s872_s25 = scalar_lea.vmem %s871_s13, 256  ;;  %p873_p4 = scmp.lt.s32.totalorder %s1137_s2, %s871_s13 }
 0x1bc   : > { %p868_p2 = pnand %p867_p1, %p1026_p5  ;;  %p874_p7 = scmp.lt.s32.totalorder %s872_s25, %s866_s17 }
 0x1be   : > { %p869_p3 = pneg %p868_p2  ;;  %p875_p8 = por %p874_p7, %p873_p4 }
 0x1c0   : > { %p876_p9 = pnand %p875_p8, %p869_p3 }
 0x27a   : > { %v566_v40 = vpop.f32.mrb[0].mxu1 }
 0x27b   : > { %v567_v42 = vadd.f32 %v725_v39, %v566_v40  ;;  %v778_v43 = vpop.f32.mrb[1].mxu1 }
 0x27c   : > { %v569_v44 = vpop.f32.mrb[2].mxu1 }
 0x27d   : > { %v573_v45 = vadd.f32 %v572_v41, %v567_v42  ;;  %v779_v46 = vpop.f32.mrb[3].mxu1 }
 0x27f   : > { %574 = vst.msk [vmem:[%s340_s0] sm:$0xff] %vm358_vm0, %v573_v45 }
 0x280   : > { %879 = shalt.err (!%p876_p9)
}
 0x281   : > { %s880_s14 = scalar_lea.hbm %s1135_s16, 128  ;;  %s884_s24 = scalar_lea.hbm %s1187_s8, 256 }
 0x282   : > { %p881_p10 = scmp.ne.s32.totalorder %s1135_s16, %s880_s14  ;;  %p885_p13 = scmp.lt.u32.totalorder %s1135_s16, %s1187_s8 }
 0x283   : > { %p886_p0 = scmp.lt.u32.totalorder %s884_s24, %s880_s14  ;;  %p888_p2 = scmp.lt.u32.totalorder %s880_s14, %s1135_s16 }
 0x284   : > { %p882_p11 = pnand %p881_p10, %p1026_p5 }
 0x285   : > { %p887_p1 = por %p886_p0, %p885_p13 }
 0x286   : > { %p883_p12 = pneg %p882_p11 }
 0x287   : > { %p889_p3 = por %p888_p2, %p887_p1 }
 0x289   : > { %p890_p4 = pnand %p889_p3, %p883_p12 }
 0x28b   : > { %893 = shalt.err (!%p890_p4)
}
 0x28c   : > { %780 = dma.vmem_to_hbm [thread:$0]  (%p1026_p5), %s1137_s2, 128, %s1135_s16, %s577_s23  }
 0x28d PF: > { %p791_p7 = scmp.ge.s32.totalorder %s932_s12, 2  ;;  %s620_s28 = sand.u32 1, %s920_s30  }
 0x28e   : > { %s621_s29 = scalar_lea.sflag [#allocation3], %s620_s28 }
 0x28f   : > { %p785_p8 = pnand %p791_p7, %p1030_p6 }
 0x291   : > { %911 = dma.done.wait (!%p785_p8), %s621_s29, 128  }
 0x292   : > { %913 = vsyncadd (!%p785_p8), %s621_s29, 4294967168  ;;  %s630_s17 = scalar_lea.sflag [#allocation5], %s620_s28 }
 0x293   : > { %915 = dma.done.wait (!%p785_p8), %s630_s17, 128  }
 0x294   : > { %917 = vsyncadd (!%p785_p8), %s630_s17, 4294967168  ;;  %p23_p5 = scmp.ge.s32.totalorder %s1013_s15, 4   ;;  %s1201_s30 = smov %s924_s10 }
 0x295   : > { %s1202_s10 = smov %s928_s11  ;;  %s1203_s11 = smov %s1024_s18 }
 0x296   : > { %s1204_s12 = smov %s1013_s15  ;;  %25 = sbr.rel (!%p23_p5) target bundleno = 8 (0x8), region = 107 }
 0x29d   :  { %635 = vsyncpa [#allocation3], 1 }
 0x29e   :  { %637 = vsyncpa [#allocation3 + $0x1], 1 }
 0x29f   :  { %638 = vsyncpa [#allocation5], 1 }
 0x2a0   :  { %640 = vsyncpa [#allocation5 + $0x1], 1 }

</bundles_post_ra>
